<compile_context>
chip_gen: v6e
topology: v6e:2x2x1
jax: 0.10.0
libtpu: 0.0.40
codegen_flags: <defaults>
</compile_context>

<pallas_src>
import math
import functools

import jax
import jax.numpy as jnp
from jax.experimental import pallas as pl
from jax.experimental.pallas import tpu as pltpu


def _round_up(x, m):
    return ((x + m - 1) // m) * m


def _pick_tile(n, requested, granularity):
    """Largest tile <= requested that is a multiple of `granularity` and
    divides n.  Callers pad n so n % granularity == 0; the full-extent
    fallback is kept only for robustness."""
    t = min(requested, n)
    if n % granularity == 0:
        t = max(granularity, (t // granularity) * granularity)
        while n % t:
            t -= granularity
        return t
    return n


# ------------- phase 1: support = X @ W (computed exactly once) -------------

def _support_kernel(x_ref, w_ref, s_ref):
    # In-kernel bf16 cast (VPU) -> MXU bf16 path, f32 accumulation.
    s_ref[...] = jnp.dot(
        x_ref[...].astype(jnp.bfloat16),
        w_ref[...].astype(jnp.bfloat16),
        preferred_element_type=jnp.float32,
    ).astype(s_ref.dtype)


# ------- phase 2: out = adj @ support + bias (K-tiled accumulation) ---------

def _aggregate_kernel_f32(adj_ref, s_ref, b_ref, o_ref):
    """f32 output: accumulate directly into the resident output block."""
    k = pl.program_id(1)

    @pl.when(k == 0)
    def _():
        o_ref[...] = jnp.broadcast_to(b_ref[...], o_ref.shape)

    o_ref[...] += jnp.dot(
        adj_ref[...].astype(jnp.bfloat16),   # cast adj tile in-kernel
        s_ref[...],
        preferred_element_type=jnp.float32,
    )


def _aggregate_kernel_acc(adj_ref, s_ref, b_ref, o_ref, acc_ref):
    """Generic output dtype: f32 VMEM accumulator, cast on the last k step."""
    k = pl.program_id(1)

    @pl.when(k == 0)
    def _():
        acc_ref[...] = jnp.zeros_like(acc_ref)

    acc_ref[...] += jnp.dot(
        adj_ref[...].astype(jnp.bfloat16),
        s_ref[...],
        preferred_element_type=jnp.float32,
    )

    @pl.when(k == pl.num_programs(1) - 1)
    def _():
        o_ref[...] = (acc_ref[...] + b_ref[...]).astype(o_ref.dtype)


@functools.partial(jax.jit, static_argnames=("tile_m", "tile_k"))
def graph_convolution(x, weight, adj, bias=None, *, tile_m=1024, tile_k=2048):
    """GCN layer forward: adj @ (x @ weight) + bias."""
    N, f_in = x.shape
    f_out = weight.shape[1]
    out_dtype = x.dtype
    assert adj.shape == (N, N)

    if bias is None:
        bias = jnp.zeros((1, f_out), jnp.float32)
    bias = jnp.reshape(bias, (1, f_out))

    # Lane-dense output: pad F_out up to a multiple of 128, slice afterwards.
    f_out_p = _round_up(max(f_out, 128), 128)
    if f_out_p != f_out:
        weight = jnp.pad(weight, ((0, 0), (0, f_out_p - f_out)))
        bias = jnp.pad(bias, ((0, 0), (0, f_out_p - f_out)))
    bias_f32 = bias.astype(jnp.float32)

    # Pad N up to a multiple of 128: keeps adj/support tiles bounded and DMAs
    # aligned.  Padded rows/cols are zero and contribute nothing; sliced off
    # at the end.  (Only costs an extra pass when N is actually unaligned.)
    n_pad = _round_up(max(N, 128), 128)
    if n_pad != N:
        x = jnp.pad(x, ((0, n_pad - N), (0, 0)))
        adj = jnp.pad(adj, ((0, n_pad - N), (0, n_pad - N)))

    tm = _pick_tile(n_pad, tile_m, 8)       # row tile (sublane granularity)
    if n_pad // tm < 2:                     # >= 2 row blocks (v7x: 2 TCs)
        tm = _pick_tile(n_pad, n_pad // 2, 8)
    tk = _pick_tile(n_pad, tile_k, 128)     # contraction tile (lane gran.)

    vmem_limit = 48 * 1024 * 1024           # safe under v7x's 64 MiB VMEM
    adj_bytes = adj.dtype.itemsize
    out_bytes = jnp.dtype(out_dtype).itemsize

    # ---- phase 1: support = X @ W, materialized once in bf16 --------------
    support = pl.pallas_call(
        _support_kernel,
        out_shape=jax.ShapeDtypeStruct((n_pad, f_out_p), jnp.bfloat16),
        grid_spec=pltpu.PrefetchScalarGridSpec(
            num_scalar_prefetch=0,
            grid=(n_pad // tm,),
            in_specs=[
                pl.BlockSpec((tm, f_in), lambda i: (i, 0)),       # X row tile
                pl.BlockSpec((f_in, f_out_p), lambda i: (0, 0)),  # W (full)
            ],
            out_specs=pl.BlockSpec((tm, f_out_p), lambda i: (i, 0)),
        ),
        compiler_params=pltpu.CompilerParams(
            dimension_semantics=("parallel",),
            vmem_limit_bytes=vmem_limit,
        ),
        cost_estimate=pl.CostEstimate(
            flops=2 * n_pad * f_in * f_out_p,
            transcendentals=0,
            bytes_accessed=(n_pad * f_in * x.dtype.itemsize
                            + f_in * f_out_p * weight.dtype.itemsize
                            + n_pad * f_out_p * 2),
        ),
    )(x, weight)

    # ---- phase 2: out = adj @ support + bias, K-tiled accumulation --------
    in_specs = [
        pl.BlockSpec((tm, tk), lambda i, k: (i, k)),        # adj tile (native dtype)
        pl.BlockSpec((tk, f_out_p), lambda i, k: (k, 0)),   # support tile (bf16)
        pl.BlockSpec((1, f_out_p), lambda i, k: (0, 0)),    # bias (full)
    ]
    out_spec = pl.BlockSpec((tm, f_out_p), lambda i, k: (i, 0))

    if out_dtype == jnp.float32:
        kernel = _aggregate_kernel_f32
        scratch = []
    else:
        kernel = _aggregate_kernel_acc
        scratch = [pltpu.VMEM((tm, f_out_p), jnp.float32)]

    out = pl.pallas_call(
        kernel,
        out_shape=jax.ShapeDtypeStruct((n_pad, f_out_p), out_dtype),
        grid_spec=pltpu.PrefetchScalarGridSpec(
            num_scalar_prefetch=0,
            grid=(n_pad // tm, n_pad // tk),
            in_specs=in_specs,
            out_specs=out_spec,
            scratch_shapes=scratch,
        ),
        compiler_params=pltpu.CompilerParams(
            dimension_semantics=("parallel", "arbitrary"),
            vmem_limit_bytes=vmem_limit,
        ),
        cost_estimate=pl.CostEstimate(
            flops=2 * n_pad * n_pad * f_out_p,
            transcendentals=0,
            bytes_accessed=(n_pad * n_pad * adj_bytes                 # adj stream
                            + (n_pad // tm) * n_pad * f_out_p * 2     # support re-reads
                            + n_pad * f_out_p * out_bytes             # output
                            + f_out_p * 4),                           # bias
        ),
    )(adj, support, bias_f32)

    if n_pad != N or f_out_p != f_out:
        out = out[:N, :f_out]
    return out


def init_gcn_params(key, in_features, out_features, bias=True):
    """Deterministic re-implementation of GraphConvolution.reset_parameters()."""
    stdv = 1.0 / math.sqrt(out_features)
    kw, kb = jax.random.split(key)
    weight = jax.random.uniform(
        kw, (in_features, out_features), jnp.float32, minval=-stdv, maxval=stdv
    )
    if bias:
        b = jax.random.uniform(
            kb, (1, out_features), jnp.float32, minval=-stdv, maxval=stdv
        )
    else:
        b = jnp.zeros((1, out_features), jnp.float32)
    return weight, b


if __name__ == "__main__":
    key = jax.random.PRNGKey(0)
    k_param, k_x, k_adj, k_param2 = jax.random.split(key, 4)

    N, F_IN, F_OUT = 128, 64, 128

    weight, bias = init_gcn_params(k_param, F_IN, F_OUT, bias=True)
    x = jax.random.normal(k_x, (N, F_IN), jnp.float32)

    # Dense, row-normalized random adjacency (stand-in for the sparse `adj`).
    adj_raw = (jax.random.uniform(k_adj, (N, N)) < 0.1).astype(jnp.float32)
    adj_raw = adj_raw + jnp.eye(N, dtype=jnp.float32)        # self-loops
    adj = adj_raw / jnp.sum(adj_raw, axis=1, keepdims=True)  # row-normalize

    out = jax.block_until_ready(graph_convolution(x, weight, adj, bias))
    ref = adj @ (x @ weight) + bias
    assert out.shape == (N, F_OUT)
    assert jnp.allclose(out, ref, atol=5e-2, rtol=5e-2), float(
        jnp.max(jnp.abs(out - ref))
    )

    # Check 2: small F_out (exercises the feature lane-padding path).
    F_OUT2 = 16
    weight2, bias2 = init_gcn_params(k_param2, F_IN, F_OUT2, bias=True)
    out2 = jax.block_until_ready(graph_convolution(x, weight2, adj, bias2))
    ref2 = adj @ (x @ weight2) + bias2
    assert out2.shape == (N, F_OUT2)
    assert jnp.allclose(out2, ref2, atol=5e-2, rtol=5e-2), float(
        jnp.max(jnp.abs(out2 - ref2))
    )

    # Check 3: N not a multiple of 128 (exercises the node-padding path).
    N3 = 96
    x3 = x[:N3]
    adj3_raw = adj_raw[:N3, :N3]
    adj3 = adj3_raw / jnp.sum(adj3_raw, axis=1, keepdims=True)
    out3 = jax.block_until_ready(graph_convolution(x3, weight, adj3, bias))
    ref3 = adj3 @ (x3 @ weight) + bias
    assert out3.shape == (N3, F_OUT)
    assert jnp.allclose(out3, ref3, atol=5e-2, rtol=5e-2), float(
        jnp.max(jnp.abs(out3 - ref3))
    )

    print("KERNEL_OK")
</pallas_src>

<mosaic_0001>
module attributes {stable_mosaic.version = 11 : i64} {
  func.func @_aggregate_kernel_f32(%arg0: i32, %arg1: i32, %arg2: memref<64x128xf32, #tpu.memory_space<vmem>>, %arg3: memref<128x128xbf16, #tpu.memory_space<vmem>>, %arg4: memref<1x128xf32, #tpu.memory_space<vmem>>, %arg5: memref<64x128xf32, #tpu.memory_space<vmem>>) attributes {dimension_semantics = [#tpu.dimension_semantics<parallel>, #tpu.dimension_semantics<arbitrary>], iteration_bounds = array<i64: 2, 1>, scalar_prefetch = 0 : i64, scratch_operands = 0 : i64, tpu.core_type = #tpu.core_type<tc>, window_params = [{transform_indices = @transform_0, window_bounds = array<i64: 64, 128>}, {transform_indices = @transform_1, window_bounds = array<i64: 128, 128>}, {pipeline_mode = #tpu.pipeline_mode<synchronous>, transform_indices = @transform_2, window_bounds = array<i64: 1, 128>}, {transform_indices = @transform_3, window_bounds = array<i64: 64, 128>}]} {
    %c0_i32 = arith.constant 0 : i32
    %0 = arith.cmpi eq, %arg1, %c0_i32 : i32
    %1 = arith.extui %0 : i1 to i32
    %c0_i32_0 = arith.constant 0 : i32
    %2 = arith.cmpi ne, %1, %c0_i32_0 : i32
    scf.if %2 {
      %c0_8 = arith.constant 0 : index
      %c0_9 = arith.constant 0 : index
      %10 = vector.load %arg4[%c0_8, %c0_9] : memref<1x128xf32, #tpu.memory_space<vmem>>, vector<1x128xf32>
      %11 = vector.shape_cast %10 : vector<1x128xf32> to vector<1x128xf32>
      %12 = vector.broadcast %11 : vector<1x128xf32> to vector<64x128xf32>
      %c0_10 = arith.constant 0 : index
      %c0_11 = arith.constant 0 : index
      %13 = vector.load %arg5[%c0_10, %c0_11] : memref<64x128xf32, #tpu.memory_space<vmem>>, vector<64x128xf32>
      tpu.vector_store %arg5[%c0_10, %c0_11], %12 {strides = array<i32>} : memref<64x128xf32, #tpu.memory_space<vmem>>, vector<64x128xf32>,
    } else {
    }
    %c0 = arith.constant 0 : index
    %c0_1 = arith.constant 0 : index
    %3 = vector.load %arg5[%c0, %c0_1] : memref<64x128xf32, #tpu.memory_space<vmem>>, vector<64x128xf32>
    %c0_2 = arith.constant 0 : index
    %c0_3 = arith.constant 0 : index
    %4 = vector.load %arg2[%c0_2, %c0_3] : memref<64x128xf32, #tpu.memory_space<vmem>>, vector<64x128xf32>
    %5 = arith.truncf %4 : vector<64x128xf32> to vector<64x128xbf16>
    %c0_4 = arith.constant 0 : index
    %c0_5 = arith.constant 0 : index
    %6 = vector.load %arg3[%c0_4, %c0_5] : memref<128x128xbf16, #tpu.memory_space<vmem>>, vector<128x128xbf16>
    %cst = arith.constant dense<0.000000e+00> : vector<64x128xf32>
    %7 = tpu.matmul %5, %6, %cst {dimension_numbers = #tpu.dot_dimension_numbers<[1], [0], [0], [1], [0, 0, 1, 1], [], []>} : vector<64x128xbf16>, vector<128x128xbf16>, vector<64x128xf32> -> vector<64x128xf32>
    %8 = arith.addf %3, %7 : vector<64x128xf32>
    %c0_6 = arith.constant 0 : index
    %c0_7 = arith.constant 0 : index
    %9 = vector.load %arg5[%c0_6, %c0_7] : memref<64x128xf32, #tpu.memory_space<vmem>>, vector<64x128xf32>
    tpu.vector_store %arg5[%c0_6, %c0_7], %8 {strides = array<i32>} : memref<64x128xf32, #tpu.memory_space<vmem>>, vector<64x128xf32>,
    return
  }
  func.func @transform_0(%arg0: i32, %arg1: i32) -> (i32, i32) {
    %c0_i32 = arith.constant 0 : i32
    return %arg0, %arg1 : i32, i32
  }
  func.func @transform_1(%arg0: i32, %arg1: i32) -> (i32, i32) {
    %c0_i32 = arith.constant 0 : i32
    %c0_i32_0 = arith.constant 0 : i32
    return %arg1, %c0_i32 : i32, i32
  }
  func.func @transform_2(%arg0: i32, %arg1: i32) -> (i32, i32) {
    %c0_i32 = arith.constant 0 : i32
    %c0_i32_0 = arith.constant 0 : i32
    %c0_i32_1 = arith.constant 0 : i32
    return %c0_i32, %c0_i32_0 : i32, i32
  }
  func.func @transform_3(%arg0: i32, %arg1: i32) -> (i32, i32) {
    %c0_i32 = arith.constant 0 : i32
    %c0_i32_0 = arith.constant 0 : i32
    return %arg0, %c0_i32 : i32, i32
  }
}

module attributes {stable_mosaic.version = 11 : i64} {
  func.func @_support_kernel(%arg0: i32, %arg1: memref<64x64xf32, #tpu.memory_space<vmem>>, %arg2: memref<64x128xf32, #tpu.memory_space<vmem>>, %arg3: memref<64x128xbf16, #tpu.memory_space<vmem>>) attributes {dimension_semantics = [#tpu.dimension_semantics<parallel>], iteration_bounds = array<i64: 2>, scalar_prefetch = 0 : i64, scratch_operands = 0 : i64, tpu.core_type = #tpu.core_type<tc>, window_params = [{transform_indices = @transform_0, window_bounds = array<i64: 64, 64>}, {pipeline_mode = #tpu.pipeline_mode<synchronous>, transform_indices = @transform_1, window_bounds = array<i64: 64, 128>}, {transform_indices = @transform_2, window_bounds = array<i64: 64, 128>}]} {
    %c0 = arith.constant 0 : index
    %c0_0 = arith.constant 0 : index
    %0 = vector.load %arg1[%c0, %c0_0] : memref<64x64xf32, #tpu.memory_space<vmem>>, vector<64x64xf32>
    %1 = arith.truncf %0 : vector<64x64xf32> to vector<64x64xbf16>
    %c0_1 = arith.constant 0 : index
    %c0_2 = arith.constant 0 : index
    %2 = vector.load %arg2[%c0_1, %c0_2] : memref<64x128xf32, #tpu.memory_space<vmem>>, vector<64x128xf32>
    %3 = arith.truncf %2 : vector<64x128xf32> to vector<64x128xbf16>
    %cst = arith.constant dense<0.000000e+00> : vector<64x128xf32>
    %4 = tpu.matmul %1, %3, %cst {dimension_numbers = #tpu.dot_dimension_numbers<[1], [0], [0], [1], [0, 0, 1, 1], [], []>} : vector<64x64xbf16>, vector<64x128xbf16>, vector<64x128xf32> -> vector<64x128xf32>
    %5 = arith.truncf %4 : vector<64x128xf32> to vector<64x128xbf16>
    %c0_3 = arith.constant 0 : index
    %c0_4 = arith.constant 0 : index
    %6 = vector.load %arg3[%c0_3, %c0_4] : memref<64x128xbf16, #tpu.memory_space<vmem>>, vector<64x128xbf16>
    tpu.vector_store %arg3[%c0_3, %c0_4], %5 {strides = array<i32>} : memref<64x128xbf16, #tpu.memory_space<vmem>>, vector<64x128xbf16>,
    return
  }
  func.func @transform_0(%arg0: i32) -> (i32, i32) {
    %c0_i32 = arith.constant 0 : i32
    %c0_i32_0 = arith.constant 0 : i32
    return %arg0, %c0_i32 : i32, i32
  }
  func.func @transform_1(%arg0: i32) -> (i32, i32) {
    %c0_i32 = arith.constant 0 : i32
    %c0_i32_0 = arith.constant 0 : i32
    %c0_i32_1 = arith.constant 0 : i32
    return %c0_i32, %c0_i32_0 : i32, i32
  }
  func.func @transform_2(%arg0: i32) -> (i32, i32) {
    %c0_i32 = arith.constant 0 : i32
    %c0_i32_0 = arith.constant 0 : i32
    return %arg0, %c0_i32 : i32, i32
  }
}

</mosaic_0001>

<bundles_post_ra>
// kernel: graph_convolution.3
= control target key start
LH: loop header
LB: loop body
LE: loop exit
PB: predicated region body
PF: predicated region fallthrough
CT: control target
= control target key end

     0   :  { %8 = vsyncpa [#allocation3], 0  ;;  %s900_s0 = inlined_call_operand.vmem [shape: f32[128,128], index: 0, kind: input, shape index: {}]   ;;  %s901_s1 = inlined_call_operand.vmem [shape: bf16[128,128], index: 1, kind: input, shape index: {}]   ;;  %s902_s2 = inlined_call_operand.vmem [shape: f32[1,128], index: 2, kind: input, shape index: {}]   ;;  %s903_s3 = inlined_call_operand.hbm [shape: f32[128,128], index: 3, kind: output, shape index: {}]  }
   0x1   :  { %10 = vsyncpa [#allocation3 + $0x1], 0  ;;  %s746_s12 = smov 0   ;;  %s748_s13 = smov 0  }
   0x2   :  { %s750_s14 = smov 0   ;;  %s752_s15 = smov 0  }
   0x3   :  { %s754_s16 = smov 0   ;;  %s756_s17 = smov 0  }
   0x4 LB: > { %s504_s18 = sadd.s32 4294967295, %s721_s17   ;;  %s505_s19 = sadd.s32 4294967294, %s721_s17   ;;  %s721_s17 = sphi %s756_s17, %s16_s17   ;;  %s717_s16 = sphi %s754_s16, %s910_s16   ;;  %s713_s15 = sphi %s752_s15, %s909_s15   ;;  %s709_s14 = sphi %s750_s14, %s908_s14   ;;  %s705_s13 = sphi %s748_s13, %s907_s13   ;;  %s701_s12 = sphi %s746_s12, %s906_s12  }
   0x5   : > { %s28_s20 = sadd.s32 1, %s717_s16  ;;  %s110_s21 = sadd.s32 1, %s709_s14 }
   0x6   : > { %p30_p0 = scmp.ge.s32.totalorder %s28_s20, 2  ;;  %p120_p1 = scmp.ne.s32.totalorder %s709_s14, %s705_s13 }
   0x7   : > { %p121_p2 = scmp.eq.s32.totalorder %s504_s18, 1  ;;  %p126_p3 = scmp.ne.s32.totalorder %s705_s13, %s701_s12 }
   0x8   : > { %s912_s20 = smov (%p30_p0, %s28_s20), 0  ;;  %p127_p5 = scmp.eq.s32.totalorder %s505_s19, 1 }
   0x9   : > { %p786_p4 = por %p121_p2, %p120_p1  ;;  %s107_s23 = ssub.s32 %s717_s16, %s912_s20 }
   0xa   : > { %p509_p6 = scmp.ge.s32.totalorder %s721_s17, 1  ;;  %p108_p7 = scmp.eq.s32.totalorder %s107_s23, 0 }
   0xb   : > { %p793_p8 = por %p127_p5, %p126_p3  ;;  %p169_p9 = scmp.lt.s32.totalorder %s721_s17, 3 }
   0xc   : > { %s799_s25 = scalar_select %p108_p7, %s709_s14, %s110_s21  }
   0xd   : > { %p170_p10 = pnand %p509_p6, %p169_p9 }
   0xe   : > { %s511_s28 = sshll.u32 (!%p170_p10), %s713_s15, 3  ;;  %s198_s30 = sand.u32 (!%p170_p10), 1, %s705_s13  }
   0xf   : > { %173 = sbr.rel (%p170_p10) target bundleno = 268 (0x10c), region = 32  ;;  %p202_p11 = scmp.lt.s32.totalorder (!%p170_p10), %s511_s28, 15 }
  0x10   : > { %s510_s4 = sshll.u32 (!%p170_p10), %s198_s30, 6  ;;  %s527_s8 = sshll.u32 (!%p170_p10), %s713_s15, 10 }
  0x11   : > { %s200_s7 = scalar_lea.vmem (!%p170_p10), [#allocation2], %s510_s4  ;;  %s849_s18 = scalar_lea.hbm (!%p170_p10), %s903_s3, %s527_s8 }
  0x12   : > { %s855_s15 = scalar_lea.sflag (!%p170_p10), [#allocation3], %s198_s30  ;;  %s723_s21 = smov (!%p170_p10), [#allocation2]  }
  0x13   : > { %s649_s23 = sshll.u32 (!%p170_p10), %s723_s21, 4  ;;  %s650_s23 = int_to_ptr.vmem [resolvable:$false] %s649_s23 }
  0x14   : > { %v637_v0 = vld [vmem:[%s901_s1 + $0x38] sm:$0xff]   ;;  %v638_v1 = vld [vmem:[%s901_s1 + $0x30] sm:$0xff]   ;;  %s914_s28 = smov (!%p202_p11, %s511_s28), 15  ;;  %v639_v2 = vld [vmem:[%s901_s1 + $0x28] sm:$0xff]   ;;  %s651_s26 = scalar_lea.vmem %s650_s23, 2048 }
  0x15   : > { %540 = vmatprep.subr.bf16.mxu0 %v637_v0  ;;  %564 = vmatprep.subr.bf16.mxu1 %v637_v0  ;;  %s512_s6 = sshll.u32 %s914_s28, 3  ;;  %v640_v3 = vld [vmem:[%s901_s1 + $0x20] sm:$0xff]   ;;  %v641_v10 = vld [vmem:[%s901_s1 + $0x18] sm:$0xff]   ;;  %v642_v11 = vld [vmem:[%s901_s1 + $0x10] sm:$0xff]  }
  0x16   : > { %541 = vmatpush3.bf16.msra.mxu0 %v637_v0  ;;  %572 = vmatpush3.bf16.msra.mxu1 %v637_v0  ;;  %s814_s9 = scalar_lea.vmem %s900_s0, %s512_s6  ;;  %v643_v12 = vld [vmem:[%s901_s1 + $0x8] sm:$0xff]   ;;  %v644_v13 = vld [vmem:[%s901_s1] sm:$0xff]  }
  0x17   : > { %542 = vmatprep.subr.bf16.mxu0 %v638_v1  ;;  %565 = vmatprep.subr.bf16.mxu1 %v638_v1  ;;  %v245_v4 = vld [vmem:[%s814_s9] sm:$0xff]  ;;  %v246_v5 = vld [vmem:[%s814_s9 + $0x8] sm:$0xff]  ;;  %v247_v14 = vld [vmem:[%s814_s9 + $0x10] sm:$0xff] }
  0x18   : > { %v249_v6 = vld [vmem:[%s814_s9 + $0x20] sm:$0xff]  ;;  %v253_v7 = vpack.c.bf16 %v246_v5, %v245_v4  ;;  %v250_v8 = vld [vmem:[%s814_s9 + $0x28] sm:$0xff]  ;;  %v248_v15 = vld [vmem:[%s814_s9 + $0x18] sm:$0xff] }
  0x19   : > { %v255_v9 = vpack.c.bf16 %v250_v8, %v249_v6  ;;  %v251_v16 = vld [vmem:[%s814_s9 + $0x30] sm:$0xff]  ;;  %v252_v17 = vld [vmem:[%s814_s9 + $0x38] sm:$0xff]  ;;  %v254_v18 = vpack.c.bf16 %v248_v15, %v247_v14  ;;  %v513_v20 = vld [vmem:[%s902_s2] ss:$0 sm:$0xff]  ;;  %s416_s9 = sshll.u32 %s200_s7, 4  ;;  %s851_s9 = int_to_ptr.vmem [resolvable:$true] %s416_s9 }
  0x1a   : > { %543 = vmatpush3.bf16.msra.mxu0 %v638_v1  ;;  %573 = vmatpush3.bf16.msra.mxu1 %v638_v1  ;;  %v256_v19 = vpack.c.bf16 %v252_v17, %v251_v16  ;;  %s645_s19 = scalar_lea.vmem %s851_s9, 1024  ;;  %p652_p1 = scmp.lt.s32.totalorder %s851_s9, %s650_s23 }
  0x1b   : > { %544 = vmatprep.subr.bf16.mxu0 %v639_v2  ;;  %566 = vmatprep.subr.bf16.mxu1 %v639_v2  ;;  %p646_p12 = scmp.ne.s32.totalorder %s851_s9, %s645_s19  ;;  %p653_p2 = scmp.lt.s32.totalorder %s651_s26, %s645_s19 }
  0x1c   : > { %556 = vmatprep.mubr.bf16.mxu0 %v253_v7  ;;  %560 = vmatprep.mubr.bf16.mxu1 %v255_v9 }
  0x1d   : > { %p647_p13 = pnand %p646_p12, %p786_p4  ;;  %p654_p3 = por %p653_p2, %p652_p1 }
  0x1e   : > { %545 = vmatpush3.bf16.msra.mxu0 %v639_v2  ;;  %574 = vmatpush3.bf16.msra.mxu1 %v639_v2 }
  0x1f   : > { %546 = vmatprep.subr.bf16.mxu0 %v640_v3  ;;  %567 = vmatprep.subr.bf16.mxu1 %v640_v3  ;;  %p648_p0 = pneg %p647_p13 }
  0x21   : > { %p655_p5 = pnand %p654_p3, %p648_p0 }
  0x22   : > { %547 = vmatpush3.bf16.msra.mxu0 %v640_v3  ;;  %575 = vmatpush3.bf16.msra.mxu1 %v640_v3 }
  0x23   : > { %548 = vmatprep.subr.bf16.mxu0 %v641_v10  ;;  %568 = vmatprep.subr.bf16.mxu1 %v641_v10 }
  0x26   : > { %549 = vmatpush3.bf16.msra.mxu0 %v641_v10  ;;  %576 = vmatpush3.bf16.msra.mxu1 %v641_v10 }
  0x27   : > { %550 = vmatprep.subr.bf16.mxu0 %v642_v11  ;;  %569 = vmatprep.subr.bf16.mxu1 %v642_v11 }
  0x2a   : > { %551 = vmatpush3.bf16.msra.mxu0 %v642_v11  ;;  %577 = vmatpush3.bf16.msra.mxu1 %v642_v11 }
  0x2b   : > { %552 = vmatprep.subr.bf16.mxu0 %v643_v12  ;;  %570 = vmatprep.subr.bf16.mxu1 %v643_v12 }
  0x2e   : > { %553 = vmatpush3.bf16.msra.mxu0 %v643_v12  ;;  %578 = vmatpush3.bf16.msra.mxu1 %v643_v12 }
  0x2f   : > { %554 = vmatprep.subr.bf16.mxu0 %v644_v13  ;;  %571 = vmatprep.subr.bf16.mxu1 %v644_v13 }
  0x32   : > { %555 = vmatpush3.bf16.msra.mxu0 %v644_v13  ;;  %579 = vmatpush3.bf16.msra.mxu1 %v644_v13 }
  0x35   : > { %557 = vmatmul.mubr.bf16.vlgmr.msra.gmra.mxu0 %v254_v18  ;;  %561 = vmatmul.mubr.bf16.vlgmr.msra.gmra.mxu1 %v256_v19 }
  0xf5   : > { %v558_v21 = vpop.f32.mrf.mxu0  ;;  %v562_v22 = vpop.f32.mrf.mxu1 }
  0xf6   : > { %v388_v23 = vadd.f32 %v558_v21, %v513_v20  ;;  %v392_v24 = vadd.f32 %v562_v22, %v513_v20 }
  0xf7   : > { %v355_v25 = vpop.f32.mrf.mxu0  ;;  %v371_v26 = vpop.f32.mrf.mxu1 }
  0xf8   : > { %396 = vst [vmem:[%s200_s7 + $0x10] sm:$0xff] %v388_v23  ;;  %400 = vst [vmem:[%s200_s7 + $0x30] sm:$0xff] %v392_v24  ;;  %v386_v27 = vadd.f32 %v513_v20, %v355_v25  ;;  %v390_v28 = vadd.f32 %v513_v20, %v371_v26 }
  0xf9   : > { %v559_v29 = vpop.f32.mrf.mxu0  ;;  %v563_v30 = vpop.f32.mrf.mxu1 }
  0xfa   : > { %394 = vst [vmem:[%s200_s7] sm:$0xff] %v386_v27  ;;  %398 = vst [vmem:[%s200_s7 + $0x20] sm:$0xff] %v390_v28  ;;  %v389_v31 = vadd.f32 %v559_v29, %v513_v20  ;;  %v393_v32 = vadd.f32 %v563_v30, %v513_v20 }
  0xfb   : > { %v358_v33 = vpop.f32.mrf.mxu0  ;;  %v374_v34 = vpop.f32.mrf.mxu1 }
  0xfc   : > { %397 = vst [vmem:[%s200_s7 + $0x18] sm:$0xff] %v389_v31  ;;  %401 = vst [vmem:[%s200_s7 + $0x38] sm:$0xff] %v393_v32  ;;  %v387_v35 = vadd.f32 %v513_v20, %v358_v33  ;;  %v391_v36 = vadd.f32 %v513_v20, %v374_v34 }
  0xfe   : > { %395 = vst [vmem:[%s200_s7 + $0x8] sm:$0xff] %v387_v35  ;;  %399 = vst [vmem:[%s200_s7 + $0x28] sm:$0xff] %v391_v36 }
  0xff   : > { %658 = shalt.err (!%p655_p5)
}
 0x100   : > { %s659_s27 = scalar_lea.hbm %s849_s18, 1024  ;;  %s663_s30 = scalar_lea.hbm %s903_s3, 2048 }
 0x101   : > { %p660_p6 = scmp.ne.s32.totalorder %s849_s18, %s659_s27  ;;  %p664_p10 = scmp.lt.s32.totalorder %s849_s18, %s903_s3 }
 0x102   : > { %p665_p11 = scmp.lt.s32.totalorder %s663_s30, %s659_s27 }
 0x103   : > { %p661_p7 = pnand %p660_p6, %p786_p4 }
 0x104   : > { %p666_p12 = por %p665_p11, %p664_p10 }
 0x105   : > { %p662_p9 = pneg %p661_p7 }
 0x107   : > { %p667_p13 = pnand %p666_p12, %p662_p9 }
 0x109   : > { %670 = shalt.err (!%p667_p13)
}
 0x10a   : > { %s724_s6 = smov 128   ;;  %s725_s7 = smov 8  }
 0x10b   : > { %580 = dma.vmem_to_hbm [thread:$0]  (%p786_p4), %s851_s9, 1024, %s849_s18, %s855_s15, %s724_s6, %s724_s6, %s725_s7  }
 0x10c PF: > { %p586_p0 = scmp.ge.s32.totalorder %s721_s17, 2  ;;  %s431_s8 = sand.u32 1, %s701_s12  }
 0x10d   : > { %s432_s10 = scalar_lea.sflag [#allocation3], %s431_s8 }
 0x10e   : > { %p583_p1 = pnand %p586_p0, %p793_p8 }
 0x110   : > { %p584_p2 = pneg %p583_p1 }
 0x112   : > { %696 = dma.done.wait (%p584_p2), %s432_s10, 1024  }
 0x113   : > { %698 = vsyncadd (%p584_p2), %s432_s10, 4294966272  ;;  %s16_s17 = sadd.s32 1, %s721_s17   ;;  %s906_s12 = smov %s705_s13 }
 0x114   : > { %p13_p3 = scmp.ge.s32.totalorder %s16_s17, 4   ;;  %s907_s13 = smov %s709_s14 }
 0x115   : > { %s908_s14 = smov %s799_s25  ;;  %s909_s15 = smov %s717_s16 }
 0x116   : > { %s910_s16 = smov %s912_s20  ;;  %15 = sbr.rel (!%p13_p3) target bundleno = 4 (0x4), region = 74 }
 0x11b   :  { %437 = vsyncpa [#allocation3], 1 }
 0x11c   :  { %439 = vsyncpa [#allocation3 + $0x1], 1 }

// kernel: graph_convolution.2
= control target key start
LH: loop header
LB: loop body
LE: loop exit
PB: predicated region body
PF: predicated region fallthrough
CT: control target
= control target key end

     0   :  { %s463_s9 = smov 0   ;;  %s512_s0 = inlined_call_operand.vmem [shape: f32[128,64], index: 0, kind: input, shape index: {}]   ;;  %s513_s1 = inlined_call_operand.vmem [shape: f32[64,128], index: 1, kind: input, shape index: {}]   ;;  %s514_s2 = inlined_call_operand.vmem [shape: bf16[128,128], index: 2, kind: output, shape index: {}]  }
   0x1 LB: > { %s346_s10 = sadd.s32 4294967295, %s446_s9   ;;  %p350_p0 = scmp.ge.s32.totalorder %s446_s9, 1  ;;  %s446_s9 = sphi %s463_s9, %s12_s9  }
   0x2   : > { %p113_p1 = scmp.lt.s32.totalorder %s446_s9, 3 }
   0x4   : > { %p114_p2 = pnand %p350_p0, %p113_p1 }
   0x5   : > { %s351_s17 = sshll.u32 (!%p114_p2), %s346_s10, 3 }
   0x6   : > { %117 = sbr.rel (%p114_p2) target bundleno = 232 (0xe8), region = 28  ;;  %p136_p3 = scmp.lt.s32.totalorder (!%p114_p2), %s351_s17, 15 }
   0xb   : > { %v166_v0 = vld [vmem:[%s513_s1 + $0x30] sm:$0xff]  ;;  %v167_v1 = vld [vmem:[%s513_s1 + $0x38] sm:$0xff]  ;;  %v164_v2 = vld [vmem:[%s513_s1 + $0x20] sm:$0xff]  ;;  %s516_s17 = smov (!%p136_p3, %s351_s17), 15  ;;  %vm172_vm0 = vcmask 523264  }
   0xc   : > { %v171_v3 = vpack.c.bf16 %v167_v1, %v166_v0  ;;  %v165_v4 = vld [vmem:[%s513_s1 + $0x28] sm:$0xff]  ;;  %v162_v6 = vld [vmem:[%s513_s1 + $0x10] sm:$0xff]  ;;  %v163_v7 = vld [vmem:[%s513_s1 + $0x18] sm:$0xff]  ;;  %s352_s24 = sshll.u32 %s516_s17, 3  ;;  %s354_s4 = sshll.u32 %s516_s17, 2 }
   0xd   : > { %v170_v5 = vpack.c.bf16 %v165_v4, %v164_v2  ;;  %v169_v8 = vpack.c.bf16 %v163_v7, %v162_v6  ;;  %v160_v9 = vld [vmem:[%s513_s1] sm:$0xff]  ;;  %v161_v10 = vld [vmem:[%s513_s1 + $0x8] sm:$0xff]  ;;  %s139_s3 = scalar_lea.vmem %s512_s0, %s352_s24  ;;  %s145_s7 = scalar_lea.vmem %s514_s2, %s354_s4 }
   0xe   : > { %408 = vmatprep.subr.bf16.mxu0 %v171_v3  ;;  %424 = vmatprep.subr.bf16.mxu1 %v171_v3  ;;  %v148_v11 = vld [vmem:[%s139_s3] sm:$0xff]  ;;  %v149_v12 = vld [vmem:[%s139_s3 + $0x8] sm:$0xff]  ;;  %v168_v16 = vpack.c.bf16 %v161_v10, %v160_v9  ;;  %v150_v18 = vld [vmem:[%s139_s3 + $0x10] sm:$0xff] }
   0xf   : > { %409 = vmatpush3.bf16.msra.mxu0 %v171_v3  ;;  %428 = vmatpush3.bf16.msra.mxu1 %v171_v3  ;;  %v152_v13 = vld [vmem:[%s139_s3 + $0x20] sm:$0xff]  ;;  %v156_v14 = vpack.c.bf16 %v149_v12, %v148_v11  ;;  %v153_v15 = vld [vmem:[%s139_s3 + $0x28] sm:$0xff]  ;;  %v151_v19 = vld [vmem:[%s139_s3 + $0x18] sm:$0xff] }
  0x10   : > { %410 = vmatprep.subr.bf16.mxu0 %v170_v5  ;;  %425 = vmatprep.subr.bf16.mxu1 %v170_v5  ;;  %v158_v17 = vpack.c.bf16 %v153_v15, %v152_v13  ;;  %v154_v20 = vld [vmem:[%s139_s3 + $0x30] sm:$0xff]  ;;  %v155_v21 = vld [vmem:[%s139_s3 + $0x38] sm:$0xff]  ;;  %v157_v22 = vpack.c.bf16 %v151_v19, %v150_v18 }
  0x11   : > { %416 = vmatprep.mubr.msk.bf16.mxu0 %vm172_vm0, %v156_v14  ;;  %v159_v23 = vpack.c.bf16 %v155_v21, %v154_v20 }
  0x12   : > { %420 = vmatprep.mubr.msk.bf16.mxu1 %vm172_vm0, %v158_v17 }
  0x13   : > { %411 = vmatpush3.bf16.msra.mxu0 %v170_v5  ;;  %429 = vmatpush3.bf16.msra.mxu1 %v170_v5 }
  0x14   : > { %412 = vmatprep.subr.bf16.mxu0 %v169_v8  ;;  %426 = vmatprep.subr.bf16.mxu1 %v169_v8 }
  0x17   : > { %413 = vmatpush3.bf16.msra.mxu0 %v169_v8  ;;  %430 = vmatpush3.bf16.msra.mxu1 %v169_v8 }
  0x18   : > { %414 = vmatprep.subr.bf16.mxu0 %v168_v16  ;;  %427 = vmatprep.subr.bf16.mxu1 %v168_v16 }
  0x1b   : > { %415 = vmatpush3.bf16.msra.mxu0 %v168_v16  ;;  %431 = vmatpush3.bf16.msra.mxu1 %v168_v16 }
  0x1e   : > { %417 = vmatmul.mubr.msk.bf16.vlgmr.msra.gmra.mxu0 %vm172_vm0, %v157_v22  ;;  %421 = vmatmul.mubr.msk.bf16.vlgmr.msra.gmra.mxu1 %vm172_vm0, %v159_v23 }
  0xde   : > { %v418_v24 = vpop.f32.mrf.mxu0  ;;  %v422_v25 = vpop.f32.mrf.mxu1 }
  0xe0   : > { %v219_v26 = vpop.f32.mrf.mxu0  ;;  %v235_v27 = vpop.f32.mrf.mxu1 }
  0xe2   : > { %v419_v28 = vpop.f32.mrf.mxu0  ;;  %v423_v29 = vpop.f32.mrf.mxu1 }
  0xe3   : > { %v385_v30 = vpack.c.bf16 %v419_v28, %v418_v24  ;;  %v395_v31 = vpack.c.bf16 %v423_v29, %v422_v25 }
  0xe4   : > { %v222_v32 = vpop.f32.mrf.mxu0  ;;  %v238_v33 = vpop.f32.mrf.mxu1 }
  0xe5   : > { %397 = vst [vmem:[%s145_s7 + $0x8] sm:$0xff] %v385_v30   ;;  %399 = vst [vmem:[%s145_s7 + $0x18] sm:$0xff] %v395_v31   ;;  %v380_v34 = vpack.c.bf16 %v222_v32, %v219_v26  ;;  %v390_v35 = vpack.c.bf16 %v238_v33, %v235_v27 }
  0xe7   : > { %381 = vst [vmem:[%s145_s7] sm:$0xff] %v380_v34   ;;  %398 = vst [vmem:[%s145_s7 + $0x10] sm:$0xff] %v390_v35  }
  0xe8 PF: > { %s12_s9 = sadd.s32 1, %s446_s9  }
  0xe9   : > { %p9_p4 = scmp.ge.s32.totalorder %s12_s9, 4  }
  0xeb   :  { %11 = sbr.rel (!%p9_p4) target bundleno = 1 (0x1), region = 58 }

</bundles_post_ra>
